<compile_context>
chip_gen: v7x
topology: tpu7x:2x2x1
jax: 0.10.0
libtpu: 0.0.40
codegen_flags: <defaults>
</compile_context>

<pallas_src>
import jax
import jax.numpy as jnp
from jax.experimental import pallas as pl
from jax.experimental.pallas import tpu as pltpu


# ---------------------------------------------------------------------------
# Tuning knobs.  A pure HBM->HBM copy has exactly one lever: DMA concurrency.
# ---------------------------------------------------------------------------
_DEFAULT_INFLIGHT_DMAS = 4        # saturates v5e / v6e HBM copy roofline
_BIG_TENSOR_INFLIGHT_DMAS = 8     # v7x (~3.2 TB/s) benefits from more streams
_BIG_TENSOR_BYTES = 64 << 20      # >= 64 MiB -> use the larger stream count
_MIN_TOTAL_BYTES_TO_CHUNK = 2 << 20   # below ~2 MiB a single DMA wins
_MIN_CHUNK_BYTES = 512 << 10          # never split into chunks < 512 KiB


def _sublane_pack(dtype) -> int:
    """Rows per packed sublane tile: 8 for 32-bit, 16 for 16-bit, 32 for 8-bit."""
    bits = jnp.dtype(dtype).itemsize * 8
    return max(8, (32 // max(1, bits)) * 8)


def _plan_chunks(shape, dtype):
    """Static chunk plan: (axis, bounds) or None for a single DMA.

    Chunks along the first non-unit axis (skipping leading size-1 dims, never
    the last/lane axis).  Boundaries are rounded to the dtype sublane pack
    when the chunk axis is the second-to-last axis so every DMA remains a
    whole-tile contiguous block copy.
    """
    nbytes = int(jnp.dtype(dtype).itemsize)
    for d in shape:
        nbytes *= int(d)
    if nbytes < _MIN_TOTAL_BYTES_TO_CHUNK or len(shape) < 2:
        return None

    axis = 0
    while axis < len(shape) - 1 and shape[axis] == 1:
        axis += 1
    if axis >= len(shape) - 1:          # only the lane axis has extent
        return None

    n_rows = shape[axis]
    align = _sublane_pack(dtype) if axis == len(shape) - 2 else 1

    max_inflight = (_BIG_TENSOR_INFLIGHT_DMAS
                    if nbytes >= _BIG_TENSOR_BYTES else _DEFAULT_INFLIGHT_DMAS)
    n_chunks = min(max_inflight, max(1, nbytes // _MIN_CHUNK_BYTES))
    groups = -(-n_rows // align)        # ceil-div: alignable row groups
    n_chunks = min(n_chunks, groups)
    if n_chunks < 2:
        return None

    base, rem = divmod(groups, n_chunks)
    gbounds = [0]
    for c in range(n_chunks):
        gbounds.append(gbounds[-1] + base + (1 if c < rem else 0))
    bounds = sorted({min(g * align, n_rows) for g in gbounds})
    if len(bounds) < 3:                 # collapsed to a single chunk
        return None
    return axis, bounds


def _make_copy_kernel(plan):
    """Kernel that issues all HBM->HBM DMAs, then waits on all of them."""

    def kernel(x_hbm, o_hbm, sems):
        if plan is None:
            copies = [pltpu.make_async_copy(x_hbm, o_hbm, sems.at[0])]
        else:
            axis, bounds = plan
            lead = tuple(pl.ds(0, 1) for _ in range(axis))  # leading size-1 dims
            copies = []
            for c in range(len(bounds) - 1):
                lo, hi = bounds[c], bounds[c + 1]
                idx = lead + (pl.ds(lo, hi - lo),)
                copies.append(
                    pltpu.make_async_copy(x_hbm.at[idx], o_hbm.at[idx], sems.at[c])
                )
        for cp in copies:   # issue all DMAs (concurrently in flight)
            cp.start()
        for cp in copies:   # then wait for completion
            cp.wait()

    return kernel


def _pallas_copy(x):
    """Materialize `x` into a new buffer via HBM->HBM DMA (bit-identical)."""
    plan = _plan_chunks(x.shape, x.dtype)
    n_sems = 1 if plan is None else len(plan[1]) - 1
    nbytes = int(x.size) * int(x.dtype.itemsize)
    return pl.pallas_call(
        _make_copy_kernel(plan),
        out_shape=jax.ShapeDtypeStruct(x.shape, x.dtype),
        # Leave both operands in HBM; the kernel drives the DMAs itself
        # (zero VMEM use -> immune to v7x's 64 MiB VMEM budget).
        in_specs=[pl.BlockSpec(memory_space=pl.ANY)],
        out_specs=pl.BlockSpec(memory_space=pl.ANY),
        scratch_shapes=[pltpu.SemaphoreType.DMA((n_sems,))],
        cost_estimate=pl.CostEstimate(
            flops=0, transcendentals=0, bytes_accessed=2 * nbytes),
    )(x)


class RetrieveRefModule:
    """JAX/Pallas port of the PyTorch RetrieveRefModule.

    forward(inputs: dict[str, Array]) -> inputs[self.name]

    Default path is a pure dictionary lookup (exactly the PyTorch semantics:
    the same tensor is returned, no copy).  Set `materialize=True` to force a
    distinct output buffer via the Pallas HBM->HBM DMA kernel.
    """

    def __init__(self, name: str, materialize: bool = False) -> None:
        self.name = name
        self.materialize = materialize

    def __call__(self, inputs):
        return self.forward(inputs)

    def forward(self, inputs):
        out = inputs[self.name]          # dictionary lookup — the whole op
        if not self.materialize:
            return out                   # zero-cost identity (matches PyTorch)
        return _pallas_copy(out)

    def extra_repr(self) -> str:
        return self.name


if __name__ == "__main__":
    key = jax.random.PRNGKey(0)
    k1, k2, k3, k4 = jax.random.split(key, 4)

    # Layered inputs: a dict mapping layer names to tensors.  Shapes chosen to
    # exercise every path: small NCHW activation, tiny unaligned bf16 tensor
    # with a leading size-1 dim, a 2 MiB 3-D tensor (batch-axis chunking), and
    # a 3 MiB 2-D tensor (sublane-aligned row chunking).
    inputs = {
        "layer_a": jax.random.normal(k1, (2, 4, 16, 16), dtype=jnp.float32),
        "layer_b": jax.random.normal(k2, (1, 8, 5, 7), dtype=jnp.bfloat16),
        "layer_c": jax.random.normal(k3, (8, 128, 512), dtype=jnp.float32),
        "layer_d": jax.random.normal(k4, (768, 1024), dtype=jnp.float32),
    }

    ok = True

    # Default path: forward is the dictionary lookup itself (no copy, no kernel).
    for name in inputs:
        out = RetrieveRefModule(name)(inputs)
        ok &= out is inputs[name]

    # Forced-materialization path: exercises the Pallas HBM->HBM DMA kernel
    # (single-DMA small tensors and chunked large tensors).
    for name in inputs:
        mod = RetrieveRefModule(name, materialize=True)
        out = jax.block_until_ready(mod(inputs))
        ok &= out.shape == inputs[name].shape
        ok &= out.dtype == inputs[name].dtype
        ok &= bool(jnp.all(out == inputs[name]))

    assert ok
    print("KERNEL_OK")
</pallas_src>

<mosaic_0001>
module attributes {stable_mosaic.version = 11 : i64} {
  func.func @kernel(%arg0: memref<2x4x16x16xf32, #tpu.memory_space<any>>, %arg1: memref<2x4x16x16xf32, #tpu.memory_space<any>>, %arg2: memref<1x!tpu.dma_semaphore, #tpu.memory_space<semaphore_mem>>) attributes {dimension_semantics = [], scalar_prefetch = 0 : i64, scratch_operands = 1 : i64, tpu.core_type = #tpu.core_type<tc>} {
    %c0_i32 = arith.constant 0 : i32
    %0 = tpu.memref_slice %arg2[%c0_i32] : memref<1x!tpu.dma_semaphore, #tpu.memory_space<semaphore_mem>> -> memref<1x!tpu.dma_semaphore, #tpu.memory_space<semaphore_mem>>
    %1 = tpu.memref_squeeze %0 : memref<1x!tpu.dma_semaphore, #tpu.memory_space<semaphore_mem>> -> memref<!tpu.dma_semaphore, #tpu.memory_space<semaphore_mem>>
    tpu.enqueue_dma source(%arg0 : memref<2x4x16x16xf32, #tpu.memory_space<any>>) target(%arg1 : memref<2x4x16x16xf32, #tpu.memory_space<any>>) target_semaphore(%1 : memref<!tpu.dma_semaphore, #tpu.memory_space<semaphore_mem>>)
    %c0_i32_0 = arith.constant 0 : i32
    %2 = tpu.memref_slice %arg2[%c0_i32_0] : memref<1x!tpu.dma_semaphore, #tpu.memory_space<semaphore_mem>> -> memref<1x!tpu.dma_semaphore, #tpu.memory_space<semaphore_mem>>
    %3 = tpu.memref_squeeze %2 : memref<1x!tpu.dma_semaphore, #tpu.memory_space<semaphore_mem>> -> memref<!tpu.dma_semaphore, #tpu.memory_space<semaphore_mem>>
    tpu.wait_dma2 semaphore(%3 : memref<!tpu.dma_semaphore, #tpu.memory_space<semaphore_mem>>) src(%arg0 : memref<2x4x16x16xf32, #tpu.memory_space<any>>) dst(%arg1 : memref<2x4x16x16xf32, #tpu.memory_space<any>>)
    return
  }
}

</mosaic_0001>

<bundles_post_ra>
// kernel: tpu_custom_call.1
= control target key start
LH: loop header
LB: loop body
LE: loop exit
PB: predicated region body
PF: predicated region fallthrough
CT: control target
= control target key end

     0   :  { %s36_s6 = smov [#allocation2]   ;;  %s37_s7 = smov [#allocation3]   ;;  %s55_s0 = inlined_call_operand.hbm [shape: f32[2,4,16,16], index: 0, kind: input, shape index: {}]   ;;  %s56_s1 = inlined_call_operand.hbm [shape: f32[2,4,16,16], index: 1, kind: output, shape index: {}]  }
   0x1   :  { %s38_s8 = smov 0  }
   0x2   :  { %18 = dma.general %s55_s0, 2048, %s56_s1, %s36_s6, %s37_s7, [#allocation4], %s38_s8, 0  }
   0x3   :  { %34 = dma.done.wait [#allocation2], 2048 }
   0x4   :  { %35 = vsyncadd [#allocation2], 4294965248 }
   0x5   :  { %24 = vsyncmov [#allocation2] }
   0x8   :  { %s25_s13 = vpop.sfrf %24 }
   0x9   :  { %p30_p0 = scmp.ne.s32.totalorder %s25_s13, 0 }
   0xb   :  { %29 = shalt.err (%p30_p0)  }

</bundles_post_ra>
